<compile_context>
chip_gen: v5e
topology: v5e:2x2
jax: 0.10.0
libtpu: 0.0.40
codegen_flags: <defaults>
</compile_context>

<pallas_src>
import jax
import jax.numpy as jnp
from jax import lax
from jax.experimental import pallas as pl
from jax.experimental.pallas import tpu as pltpu

# Hyper-parameters from Relative_Attention(query_dim=64, key_dim=64, n_heads=2)
QUERY_DIM = 64
KEY_DIM = 64
N_HEADS = 2
HID = N_HEADS * KEY_DIM  # 128

# Shapes hard-coded by the module usage: q=(1,2,1,64), k=v=(1,2,10,64)
B = 1
G = 2
LQ = 1
LK = 10

GLQ = B * G * LQ   # 2  query rows
GLK = B * G * LK   # 20 key/value rows

NEG_INF = -1e30    # large-negative (not -inf) keeps every score row finite


def _attention_kernel(q_ref, k_ref, v_ref, w1_ref, w2_ref, o_ref):
    f32 = jnp.float32

    # Packed weights: w1 rows 0:64 = [wq | wk | wv], row 64 = [bq | bk | bv].
    w_q = w1_ref[0:QUERY_DIM, 0:HID]
    w_k = w1_ref[0:QUERY_DIM, HID:2 * HID]
    w_v = w1_ref[0:QUERY_DIM, 2 * HID:3 * HID]
    b_q = w1_ref[QUERY_DIM:QUERY_DIM + 1, 0:HID]
    b_k = w1_ref[QUERY_DIM:QUERY_DIM + 1, HID:2 * HID]
    b_v = w1_ref[QUERY_DIM:QUERY_DIM + 1, 2 * HID:3 * HID]
    # w2 rows 0:128 = wo, row 128 = bo.
    w_o = w2_ref[0:HID, :]
    b_o = w2_ref[HID:HID + 1, :]

    # Q/K/V projections (bias rows broadcast over sublanes).
    qp = jnp.dot(q_ref[...], w_q, preferred_element_type=f32) + b_q   # (2, 128)
    kp = jnp.dot(k_ref[...], w_k, preferred_element_type=f32) + b_k   # (20, 128)
    vp = jnp.dot(v_ref[...], w_v, preferred_element_type=f32) + b_v   # (20, 128)

    # Head lane masks: head 0 = lanes [0:64), head 1 = lanes [64:128).
    lane = lax.broadcasted_iota(jnp.int32, (1, HID), 1)
    m0 = (lane < KEY_DIM).astype(f32)
    m1 = 1.0 - m0

    # Per-head scores, UNSCALED (matches the reference).  Contraction runs over
    # all 128 lanes; the other head's lanes are zeroed by the mask, so no lane
    # slicing / shifting is ever needed.
    s0 = lax.dot_general(qp * m0, kp, (((1,), (1,)), ((), ())),
                         preferred_element_type=f32)                  # (2, 20)
    s1 = lax.dot_general(qp * m1, kp, (((1,), (1,)), ((), ())),
                         preferred_element_type=f32)                  # (2, 20)

    # Group mask: query row g attends only to key columns [g*LK, (g+1)*LK).
    row = lax.broadcasted_iota(jnp.int32, (GLQ, GLK), 0)
    col = lax.broadcasted_iota(jnp.int32, (GLQ, GLK), 1)
    valid = (col >= row * LK) & (col < (row + 1) * LK)

    def masked_softmax(s):
        s = jnp.where(valid, s, NEG_INF)
        s = s - jnp.max(s, axis=-1, keepdims=True)
        p = jnp.exp(s)
        return p * pl.reciprocal(jnp.sum(p, axis=-1, keepdims=True), approx=True)

    p0 = masked_softmax(s0)
    p1 = masked_softmax(s1)
    # TODO(synk): reference calls F.dropout with an undefined `dropout_p`; identity here.

    # P @ V per head; only the matching head's lanes of each result are kept.
    c0 = jnp.dot(p0, vp, preferred_element_type=f32)                  # (2, 128)
    c1 = jnp.dot(p1, vp, preferred_element_type=f32)                  # (2, 128)
    ctx = c0 * m0 + c1 * m1                                           # (2, 128)

    out = jnp.dot(ctx, w_o, preferred_element_type=f32) + b_o         # (2, 128)
    o_ref[...] = out.astype(o_ref.dtype)


def pack_params(params):
    """Pack the 8 linear params into two dense slabs (done once, no zero blocks)."""
    wq, bq, wk, bk, wv, bv, wo, bo = params
    w1 = jnp.concatenate(
        [jnp.concatenate([wq, wk, wv], axis=1),       # (64, 384)
         jnp.concatenate([bq, bk, bv], axis=1)],      # (1, 384)
        axis=0)                                       # (65, 384)
    w2 = jnp.concatenate([wo, bo], axis=0)            # (129, 128)
    return w1, w2


@jax.jit
def relative_attention_forward(q, k, v, w1, w2):
    """q: (B,G,LQ,64), k/v: (B,G,LK,64) float32 -> (B,G,LQ,128)."""
    q2 = q.reshape(GLQ, QUERY_DIM)
    k2 = k.reshape(GLK, KEY_DIM)
    v2 = v.reshape(GLK, KEY_DIM)

    flops = 2 * (GLQ * QUERY_DIM * HID
                 + 2 * GLK * KEY_DIM * HID
                 + 2 * GLQ * HID * GLK
                 + 2 * GLQ * GLK * HID
                 + GLQ * HID * HID)
    transcendentals = 2 * GLQ * GLK + 2 * GLQ
    bytes_accessed = 4 * (GLQ * QUERY_DIM + 2 * GLK * KEY_DIM
                          + (QUERY_DIM + 1) * 3 * HID
                          + (HID + 1) * HID
                          + GLQ * HID)

    out2 = pl.pallas_call(
        _attention_kernel,
        out_shape=jax.ShapeDtypeStruct((GLQ, HID), jnp.float32),
        in_specs=[pl.BlockSpec(memory_space=pltpu.MemorySpace.VMEM)] * 5,
        out_specs=pl.BlockSpec(memory_space=pltpu.MemorySpace.VMEM),
        cost_estimate=pl.CostEstimate(flops=flops,
                                      transcendentals=transcendentals,
                                      bytes_accessed=bytes_accessed),
    )(q2, k2, v2, w1, w2)
    return out2.reshape(B, G, LQ, HID)


def init_params(key):
    """Deterministic PyTorch-Linear-style init; weights stored as (in, out)."""
    def linear(k, fan_in, fan_out):
        kw, kb = jax.random.split(k)
        bound = 1.0 / (fan_in ** 0.5)
        w = jax.random.uniform(kw, (fan_in, fan_out), jnp.float32, -bound, bound)
        b = jax.random.uniform(kb, (1, fan_out), jnp.float32, -bound, bound)
        return w, b
    k1, k2, k3, k4 = jax.random.split(key, 4)
    wq, bq = linear(k1, QUERY_DIM, HID)
    wk, bk = linear(k2, KEY_DIM, HID)
    wv, bv = linear(k3, KEY_DIM, HID)
    wo, bo = linear(k4, HID, HID)
    return (wq, bq, wk, bk, wv, bv, wo, bo)


def make_qkv(key):
    kq, kk, kv = jax.random.split(key, 3)
    q = jax.random.normal(kq, (B, G, LQ, QUERY_DIM), jnp.float32)
    k = jax.random.normal(kk, (B, G, LK, KEY_DIM), jnp.float32)
    v = jax.random.normal(kv, (B, G, LK, KEY_DIM), jnp.float32)
    return q, k, v


def model_forward(x1, x2, x3, packed, key):
    # Mirrors Model.forward: x1/x2/x3 are ignored, q/k/v are freshly sampled.
    del x1, x2, x3
    q, k, v = make_qkv(key)
    w1, w2 = packed
    return relative_attention_forward(q, k, v, w1, w2)


def _ref_forward(q, k, v, params):
    """Plain-JAX reference for correctness check."""
    wq, bq, wk, bk, wv, bv, wo, bo = params
    qp = q @ wq + bq[0]
    kp = k @ wk + bk[0]
    vp = v @ wv + bv[0]
    qh = qp.reshape(B, G, LQ, N_HEADS, KEY_DIM)
    kh = kp.reshape(B, G, LK, N_HEADS, KEY_DIM)
    vh = vp.reshape(B, G, LK, N_HEADS, KEY_DIM)
    s = jnp.einsum('bgqhd,bgkhd->bghqk', qh, kh)
    p = jax.nn.softmax(s, axis=-1)
    o = jnp.einsum('bghqk,bgkhd->bgqhd', p, vh).reshape(B, G, LQ, HID)
    return o @ wo + bo[0]


if __name__ == "__main__":
    root = jax.random.PRNGKey(0)
    kp_, kx, kqkv = jax.random.split(root, 3)
    params = init_params(kp_)
    packed = pack_params(params)

    # Dummy module inputs (unused by the reference forward).
    kx1, kx2, kx3 = jax.random.split(kx, 3)
    x1 = jax.random.normal(kx1, (B, G, LQ, QUERY_DIM), jnp.float32)
    x2 = jax.random.normal(kx2, (B, G, LK, KEY_DIM), jnp.float32)
    x3 = jax.random.normal(kx3, (B, G, LK, KEY_DIM), jnp.float32)

    out = model_forward(x1, x2, x3, packed, kqkv)
    out = jax.block_until_ready(out)
    assert out.shape == (B, G, LQ, HID), out.shape

    # Cross-check against plain-JAX math with the identical q/k/v draw.
    q, k, v = make_qkv(kqkv)
    ref = _ref_forward(q, k, v, params)
    assert jnp.allclose(out, ref, atol=5e-3, rtol=5e-3), float(jnp.max(jnp.abs(out - ref)))

    print("KERNEL_OK")
</pallas_src>

<mosaic_0001>
module attributes {stable_mosaic.version = 11 : i64} {
  func.func @_attention_kernel(%arg0: memref<2x64xf32, #tpu.memory_space<vmem>>, %arg1: memref<20x64xf32, #tpu.memory_space<vmem>>, %arg2: memref<20x64xf32, #tpu.memory_space<vmem>>, %arg3: memref<65x384xf32, #tpu.memory_space<vmem>>, %arg4: memref<129x128xf32, #tpu.memory_space<vmem>>, %arg5: memref<2x128xf32, #tpu.memory_space<vmem>>) attributes {dimension_semantics = [], scalar_prefetch = 0 : i64, scratch_operands = 0 : i64, tpu.core_type = #tpu.core_type<tc>} {
    %c0 = arith.constant 0 : index
    %c0_0 = arith.constant 0 : index
    %0 = vector.load %arg3[%c0, %c0_0] : memref<65x384xf32, #tpu.memory_space<vmem>>, vector<64x128xf32>
    %c0_1 = arith.constant 0 : index
    %c128 = arith.constant 128 : index
    %1 = vector.load %arg3[%c0_1, %c128] : memref<65x384xf32, #tpu.memory_space<vmem>>, vector<64x128xf32>
    %c0_2 = arith.constant 0 : index
    %c256 = arith.constant 256 : index
    %2 = vector.load %arg3[%c0_2, %c256] : memref<65x384xf32, #tpu.memory_space<vmem>>, vector<64x128xf32>
    %c64 = arith.constant 64 : index
    %c0_3 = arith.constant 0 : index
    %3 = vector.load %arg3[%c64, %c0_3] : memref<65x384xf32, #tpu.memory_space<vmem>>, vector<1x128xf32>
    %c64_4 = arith.constant 64 : index
    %c128_5 = arith.constant 128 : index
    %4 = vector.load %arg3[%c64_4, %c128_5] : memref<65x384xf32, #tpu.memory_space<vmem>>, vector<1x128xf32>
    %c64_6 = arith.constant 64 : index
    %c256_7 = arith.constant 256 : index
    %5 = vector.load %arg3[%c64_6, %c256_7] : memref<65x384xf32, #tpu.memory_space<vmem>>, vector<1x128xf32>
    %c0_8 = arith.constant 0 : index
    %c0_9 = arith.constant 0 : index
    %6 = vector.load %arg4[%c0_8, %c0_9] : memref<129x128xf32, #tpu.memory_space<vmem>>, vector<128x128xf32>
    %c128_10 = arith.constant 128 : index
    %c0_11 = arith.constant 0 : index
    %7 = vector.load %arg4[%c128_10, %c0_11] : memref<129x128xf32, #tpu.memory_space<vmem>>, vector<1x128xf32>
    %c0_12 = arith.constant 0 : index
    %c0_13 = arith.constant 0 : index
    %8 = vector.load %arg0[%c0_12, %c0_13] : memref<2x64xf32, #tpu.memory_space<vmem>>, vector<2x64xf32>
    %cst = arith.constant dense<0.000000e+00> : vector<2x128xf32>
    %9 = tpu.matmul %8, %0, %cst {dimension_numbers = #tpu.dot_dimension_numbers<[1], [0], [0], [1], [0, 0, 1, 1], [], []>} : vector<2x64xf32>, vector<64x128xf32>, vector<2x128xf32> -> vector<2x128xf32>
    %10 = vector.broadcast %3 : vector<1x128xf32> to vector<2x128xf32>
    %11 = arith.addf %9, %10 : vector<2x128xf32>
    %c0_14 = arith.constant 0 : index
    %c0_15 = arith.constant 0 : index
    %12 = vector.load %arg1[%c0_14, %c0_15] : memref<20x64xf32, #tpu.memory_space<vmem>>, vector<20x64xf32>
    %cst_16 = arith.constant dense<0.000000e+00> : vector<20x128xf32>
    %13 = tpu.matmul %12, %1, %cst_16 {dimension_numbers = #tpu.dot_dimension_numbers<[1], [0], [0], [1], [0, 0, 1, 1], [], []>} : vector<20x64xf32>, vector<64x128xf32>, vector<20x128xf32> -> vector<20x128xf32>
    %14 = vector.broadcast %4 : vector<1x128xf32> to vector<20x128xf32>
    %15 = arith.addf %13, %14 : vector<20x128xf32>
    %c0_17 = arith.constant 0 : index
    %c0_18 = arith.constant 0 : index
    %16 = vector.load %arg2[%c0_17, %c0_18] : memref<20x64xf32, #tpu.memory_space<vmem>>, vector<20x64xf32>
    %cst_19 = arith.constant dense<0.000000e+00> : vector<20x128xf32>
    %17 = tpu.matmul %16, %2, %cst_19 {dimension_numbers = #tpu.dot_dimension_numbers<[1], [0], [0], [1], [0, 0, 1, 1], [], []>} : vector<20x64xf32>, vector<64x128xf32>, vector<20x128xf32> -> vector<20x128xf32>
    %18 = vector.broadcast %5 : vector<1x128xf32> to vector<20x128xf32>
    %19 = arith.addf %17, %18 : vector<20x128xf32>
    %20 = tpu.iota {dimensions = array<i32: 1>} : vector<1x128xi32>
    %c64_i32 = arith.constant 64 : i32
    %21 = vector.broadcast %c64_i32 : i32 to vector<1x128xi32>
    %22 = arith.cmpi slt, %20, %21 : vector<1x128xi32>
    %23 = arith.extui %22 : vector<1x128xi1> to vector<1x128xi32>
    %24 = arith.sitofp %23 : vector<1x128xi32> to vector<1x128xf32>
    %cst_20 = arith.constant 1.000000e+00 : f32
    %25 = vector.broadcast %cst_20 : f32 to vector<1x128xf32>
    %26 = arith.subf %25, %24 : vector<1x128xf32>
    %27 = vector.broadcast %24 : vector<1x128xf32> to vector<2x128xf32>
    %28 = arith.mulf %11, %27 : vector<2x128xf32>
    %cst_21 = arith.constant dense<0.000000e+00> : vector<2x20xf32>
    %29 = tpu.matmul %28, %15, %cst_21 {dimension_numbers = #tpu.dot_dimension_numbers<[1], [1], [0], [0], [0, 0, 1, 0], [], []>} : vector<2x128xf32>, vector<20x128xf32>, vector<2x20xf32> -> vector<2x20xf32>
    %30 = vector.broadcast %26 : vector<1x128xf32> to vector<2x128xf32>
    %31 = arith.mulf %11, %30 : vector<2x128xf32>
    %cst_22 = arith.constant dense<0.000000e+00> : vector<2x20xf32>
    %32 = tpu.matmul %31, %15, %cst_22 {dimension_numbers = #tpu.dot_dimension_numbers<[1], [1], [0], [0], [0, 0, 1, 0], [], []>} : vector<2x128xf32>, vector<20x128xf32>, vector<2x20xf32> -> vector<2x20xf32>
    %33 = tpu.iota {dimensions = array<i32: 0>} : vector<2x20xi32>
    %34 = tpu.iota {dimensions = array<i32: 1>} : vector<2x20xi32>
    %c10_i32 = arith.constant 10 : i32
    %35 = vector.broadcast %c10_i32 : i32 to vector<2x20xi32>
    %36 = arith.muli %33, %35 : vector<2x20xi32>
    %37 = arith.cmpi sge, %34, %36 : vector<2x20xi32>
    %c1_i32 = arith.constant 1 : i32
    %38 = vector.broadcast %c1_i32 : i32 to vector<2x20xi32>
    %39 = arith.addi %33, %38 : vector<2x20xi32>
    %c10_i32_23 = arith.constant 10 : i32
    %40 = vector.broadcast %c10_i32_23 : i32 to vector<2x20xi32>
    %41 = arith.muli %39, %40 : vector<2x20xi32>
    %42 = arith.cmpi slt, %34, %41 : vector<2x20xi32>
    %43 = arith.andi %37, %42 : vector<2x20xi1>
    %cst_24 = arith.constant -1.000000e+30 : f32
    %44 = vector.broadcast %cst_24 : f32 to vector<2x20xf32>
    %45 = arith.select %43, %29, %44 : vector<2x20xi1>, vector<2x20xf32>
    %cst_25 = arith.constant dense<0xFF800000> : vector<2xf32>
    %46 = vector.multi_reduction <maximumf>, %45, %cst_25 [1] : vector<2x20xf32> to vector<2xf32>
    %47 = vector.shape_cast %46 : vector<2xf32> to vector<2x1xf32>
    %48 = vector.broadcast %47 : vector<2x1xf32> to vector<2x20xf32>
    %49 = arith.subf %45, %48 : vector<2x20xf32>
    %50 = math.exp %49 : vector<2x20xf32>
    %cst_26 = arith.constant dense<0.000000e+00> : vector<2xf32>
    %51 = vector.multi_reduction <add>, %50, %cst_26 [1] : vector<2x20xf32> to vector<2xf32>
    %52 = vector.shape_cast %51 : vector<2xf32> to vector<2x1xf32>
    %53 = tpu.reciprocal %52 {approx = true} : vector<2x1xf32> -> vector<2x1xf32>
    %54 = vector.broadcast %53 : vector<2x1xf32> to vector<2x20xf32>
    %55 = arith.mulf %50, %54 : vector<2x20xf32>
    %cst_27 = arith.constant -1.000000e+30 : f32
    %56 = vector.broadcast %cst_27 : f32 to vector<2x20xf32>
    %57 = arith.select %43, %32, %56 : vector<2x20xi1>, vector<2x20xf32>
    %cst_28 = arith.constant dense<0xFF800000> : vector<2xf32>
    %58 = vector.multi_reduction <maximumf>, %57, %cst_28 [1] : vector<2x20xf32> to vector<2xf32>
    %59 = vector.shape_cast %58 : vector<2xf32> to vector<2x1xf32>
    %60 = vector.broadcast %59 : vector<2x1xf32> to vector<2x20xf32>
    %61 = arith.subf %57, %60 : vector<2x20xf32>
    %62 = math.exp %61 : vector<2x20xf32>
    %cst_29 = arith.constant dense<0.000000e+00> : vector<2xf32>
    %63 = vector.multi_reduction <add>, %62, %cst_29 [1] : vector<2x20xf32> to vector<2xf32>
    %64 = vector.shape_cast %63 : vector<2xf32> to vector<2x1xf32>
    %65 = tpu.reciprocal %64 {approx = true} : vector<2x1xf32> -> vector<2x1xf32>
    %66 = vector.broadcast %65 : vector<2x1xf32> to vector<2x20xf32>
    %67 = arith.mulf %62, %66 : vector<2x20xf32>
    %cst_30 = arith.constant dense<0.000000e+00> : vector<2x128xf32>
    %68 = tpu.matmul %55, %19, %cst_30 {dimension_numbers = #tpu.dot_dimension_numbers<[1], [0], [0], [1], [0, 0, 1, 1], [], []>} : vector<2x20xf32>, vector<20x128xf32>, vector<2x128xf32> -> vector<2x128xf32>
    %cst_31 = arith.constant dense<0.000000e+00> : vector<2x128xf32>
    %69 = tpu.matmul %67, %19, %cst_31 {dimension_numbers = #tpu.dot_dimension_numbers<[1], [0], [0], [1], [0, 0, 1, 1], [], []>} : vector<2x20xf32>, vector<20x128xf32>, vector<2x128xf32> -> vector<2x128xf32>
    %70 = vector.broadcast %24 : vector<1x128xf32> to vector<2x128xf32>
    %71 = arith.mulf %68, %70 : vector<2x128xf32>
    %72 = vector.broadcast %26 : vector<1x128xf32> to vector<2x128xf32>
    %73 = arith.mulf %69, %72 : vector<2x128xf32>
    %74 = arith.addf %71, %73 : vector<2x128xf32>
    %cst_32 = arith.constant dense<0.000000e+00> : vector<2x128xf32>
    %75 = tpu.matmul %74, %6, %cst_32 {dimension_numbers = #tpu.dot_dimension_numbers<[1], [0], [0], [1], [0, 0, 1, 1], [], []>} : vector<2x128xf32>, vector<128x128xf32>, vector<2x128xf32> -> vector<2x128xf32>
    %76 = vector.broadcast %7 : vector<1x128xf32> to vector<2x128xf32>
    %77 = arith.addf %75, %76 : vector<2x128xf32>
    %c0_33 = arith.constant 0 : index
    %c0_34 = arith.constant 0 : index
    %78 = vector.load %arg5[%c0_33, %c0_34] : memref<2x128xf32, #tpu.memory_space<vmem>>, vector<2x128xf32>
    tpu.vector_store %arg5[%c0_33, %c0_34], %77 {strides = array<i32>} : memref<2x128xf32, #tpu.memory_space<vmem>>, vector<2x128xf32>,
    return
  }
}

</mosaic_0001>

<bundles_post_ra>
// kernel: relative_attention_forward.1
= control target key start
LH: loop header
LB: loop body
LE: loop exit
PB: predicated region body
PF: predicated region fallthrough
CT: control target
= control target key end

     0   :  { %10 = vsyncpa [#allocation3], 0  ;;  %s597_s0 = inlined_call_operand.vmem [shape: f32[2,64], index: 0, kind: input, shape index: {}]   ;;  %s598_s1 = inlined_call_operand.vmem [shape: f32[20,64], index: 1, kind: input, shape index: {}]   ;;  %s599_s2 = inlined_call_operand.vmem [shape: f32[20,64], index: 2, kind: input, shape index: {}]   ;;  %s600_s3 = inlined_call_operand.vmem [shape: f32[65,384], index: 3, kind: input, shape index: {}]   ;;  %s601_s4 = inlined_call_operand.hbm [shape: f32[129,128], index: 4, kind: input, shape index: {}]   ;;  %s602_s5 = inlined_call_operand.hbm [shape: f32[2,128], index: 5, kind: output, shape index: {}]  }
   0x1   :  { %11 = vsyncpa [#allocation4], 0  ;;  %s24_s20 = sshll.u32 %s601_s4, 4  ;;  %s434_s21 = smov [#allocation2]   ;;  %s25_s20 = int_to_ptr.hbm [resolvable:$true] %s24_s20 }
   0x2   :  { %s26_s22 = sshll.u32 %s434_s21, 4  ;;  %s435_s23 = smov 128   ;;  %s27_s22 = int_to_ptr.vmem [resolvable:$true] %s26_s22 }
   0x3   :  { %s436_s24 = smov 8  }
   0x4   :  { %32 = dma.hbm_to_vmem [thread:$0]  %s25_s20, 2176, %s27_s22, [#allocation3], %s435_s23, %s435_s23, %s436_s24  }
   0x5   :  { %430 = dma.done.wait [#allocation3], 2176  }
   0x6   :  { %431 = vsyncadd [#allocation3], 4294965120  ;;  %v52_v0 = vld [vmem:[%s600_s3 + $0xb0] sm:$0xff]  ;;  %v51_v1 = vld [vmem:[%s600_s3 + $0x98] sm:$0xff]  ;;  %vm82_vm0 = vcmask 523264   ;;  %v182_v22 = vlaneseq  ;;  %v437_v31 = vmov 0.0  }
   0x7   :  { %126 = vmatpush.msra.mxu1 %v52_v0  ;;  %v50_v2 = vld [vmem:[%s600_s3 + $0x80] sm:$0xff]  ;;  %v44_v3 = vld [vmem:[%s600_s3 + $0xa8] sm:$0xff]  ;;  %v43_v4 = vld [vmem:[%s600_s3 + $0x90] sm:$0xff]  ;;  %vm239_vm5 = vcmask 156672   ;;  %vm267_vm6 = vcmask 1043456   ;;  %vm263_vm7 = vcmask 162816  }
   0x8   :  { %v49_v5 = vld [vmem:[%s600_s3 + $0x68] sm:$0xff]  ;;  %94 = vmatpush.msra.mxu0 %v44_v3  ;;  %v42_v6 = vld [vmem:[%s600_s3 + $0x78] sm:$0xff]  ;;  %v48_v7 = vld [vmem:[%s600_s3 + $0x50] sm:$0xff]  ;;  %v183_v25 = vand.u32 127, %v182_v22  ;;  %v231_v40 = vshrl.u32 %v182_v22, 7  ;;  %s346_s14 = sshll.u32 %s602_s5, 4  ;;  %s347_s14 = int_to_ptr.hbm [resolvable:$true] %s346_s14 }
   0x9   :  { %127 = vmatpush.msra.mxu1 %v51_v1  ;;  %v41_v8 = vld [vmem:[%s600_s3 + $0x60] sm:$0xff]  ;;  %v47_v9 = vld [vmem:[%s600_s3 + $0x38] sm:$0xff]  ;;  %v40_v10 = vld [vmem:[%s600_s3 + $0x48] sm:$0xff] }
   0xa   :  { %95 = vmatpush.msra.mxu0 %v43_v4  ;;  %v46_v11 = vld [vmem:[%s600_s3 + $0x20] sm:$0xff]  ;;  %v39_v12 = vld [vmem:[%s600_s3 + $0x30] sm:$0xff]  ;;  %v45_v13 = vld [vmem:[%s600_s3 + $0x8] sm:$0xff]  ;;  %vm184_vm1 = vcmp.lt.s32.totalorder %v183_v25, 64  ;;  %v234_v43 = vadd.s32 1, %v231_v40  ;;  %v232_v46 = vmul.u32 10, %v231_v40 }
   0xb   :  { %128 = vmatpush.msra.mxu1 %v50_v2  ;;  %v106_v14 = vld [vmem:[%s598_s1] sm:$0xff]  ;;  %v38_v15 = vld [vmem:[%s600_s3 + $0x18] sm:$0xff]  ;;  %v107_v18 = vld [vmem:[%s598_s1 + $0x8] sm:$0xff]  ;;  %v542_v32 = vsel %vm184_vm1, 1.0, %v437_v31 }
   0xc   :  { %96 = vmatpush.msra.mxu0 %v42_v6  ;;  %v37_v16 = vld [vmem:[%s600_s3] sm:$0xff]  ;;  %v108_v19 = vld [vmem:[%s598_s1 + $0x10] sm:$0xf]  ;;  %v62_v23 = vld [vmem:[%s600_s3 + $0xc8] ss:$0 sm:$0xff]  ;;  %v187_v35 = vsub.f32 1.0, %v542_v32  ;;  %vm233_vm2 = vcmp.ge.s32.totalorder %v183_v25, %v232_v46 }
   0xd   :  { %129 = vmatpush.msra.mxu1 %v49_v5  ;;  %v81_v17 = vld [vmem:[%s597_s0] sm:$0x3]  ;;  %v60_v37 = vld [vmem:[%s600_s3 + $0xb8] sm:$0xff]  ;;  %v58_v39 = vld [vmem:[%s600_s3 + $0x88] sm:$0xff]  ;;  %v235_v47 = vmul.u32 10, %v234_v43 }
   0xe   :  { %97 = vmatpush.msra.mxu0 %v41_v8  ;;  %v61_v27 = vld [vmem:[%s600_s3 + $0xc0] ss:$0 sm:$0xff]  ;;  %164 = vmatpush.msra.mxu2 %v60_v37  ;;  %v57_v41 = vld [vmem:[%s600_s3 + $0x70] sm:$0xff]  ;;  %v56_v42 = vld [vmem:[%s600_s3 + $0x58] sm:$0xff] }
   0xf   :  { %130 = vmatpush.msra.mxu1 %v48_v7  ;;  %v59_v38 = vld [vmem:[%s600_s3 + $0xa0] sm:$0xff]  ;;  %v54_v45 = vld [vmem:[%s600_s3 + $0x28] sm:$0xff]  ;;  %v53_v48 = vld [vmem:[%s600_s3 + $0x10] sm:$0xff]  ;;  %vm236_vm3 = vcmp.lt.s32.totalorder %v183_v25, %v235_v47 }
  0x10   :  { %98 = vmatpush.msra.mxu0 %v40_v10  ;;  %165 = vmatpush.msra.mxu2 %v59_v38  ;;  %v55_v44 = vld [vmem:[%s600_s3 + $0x40] sm:$0xff]  ;;  %vm237_vm4 = vmand %vm233_vm2, %vm236_vm3  ;;  %v145_v52 = vld [vmem:[%s599_s2 + $0x8] sm:$0xff] }
  0x11   :  { %131 = vmatpush.msra.mxu1 %v47_v9  ;;  %v144_v49 = vld [vmem:[%s599_s2] sm:$0xff]  ;;  %v146_v55 = vld [vmem:[%s599_s2 + $0x10] sm:$0xf]  ;;  %v65_v31 = vld [vmem:[#allocation2 + $0x8] sm:$0xff] }
  0x12   :  { %99 = vmatpush.msra.mxu0 %v39_v12  ;;  %166 = vmatpush.msra.mxu2 %v58_v39  ;;  %v63_v6 = vld [vmem:[%s600_s3 + $0xd0] ss:$0 sm:$0xff]  ;;  %v373_v40 = vld [vmem:[#allocation2 + $0x80] ss:$0 sm:$0xff]  ;;  %s438_s3 = smov [#allocation5]  }
  0x13   :  { %132 = vmatpush.msra.mxu1 %v46_v11  ;;  %v79_v11 = vld [vmem:[#allocation2 + $0x78] sm:$0xff]  ;;  %v78_v12 = vld [vmem:[#allocation2 + $0x70] sm:$0xff]  ;;  %s344_s12 = sshll.u32 %s438_s3, 4  ;;  %s345_s12 = int_to_ptr.vmem [resolvable:$true] %s344_s12 }
  0x14   :  { %100 = vmatpush.msra.mxu0 %v38_v15  ;;  %167 = vmatpush.msra.mxu2 %v57_v41  ;;  %v75_v15 = vld [vmem:[#allocation2 + $0x58] sm:$0xff] }
  0x15   :  { %133 = vmatpush.msra.mxu1 %v45_v13  ;;  %v77_v13 = vld [vmem:[#allocation2 + $0x68] sm:$0xff] }
  0x16   :  { %357 = vmatmul.msk.f32.vlgmr.msra.gmra.mxu1 %vm82_vm0, %v106_v14  ;;  %101 = vmatpush.msra.mxu0 %v37_v16  ;;  %v76_v14 = vld [vmem:[#allocation2 + $0x60] sm:$0xff]  ;;  %v74_v16 = vld [vmem:[#allocation2 + $0x50] sm:$0xff] }
  0x17   :  { %356 = vmatmul.msk.f32.vlgmr.msra.gmra.mxu0 %vm82_vm0, %v81_v17  ;;  %168 = vmatpush.msra.mxu2 %v56_v42  ;;  %v73_v17 = vld [vmem:[#allocation2 + $0x48] sm:$0xff] }
  0x18   :  { %318 = vmatpush.msrb.mxu1 %v79_v11 }
  0x19   :  { %169 = vmatpush.msra.mxu2 %v55_v44 }
  0x1a   :  { %319 = vmatpush.msrb.mxu1 %v78_v12 }
  0x1b   :  { %170 = vmatpush.msra.mxu2 %v54_v45 }
  0x1c   :  { %320 = vmatpush.msrb.mxu1 %v77_v13 }
  0x1d   :  { %171 = vmatpush.msra.mxu2 %v53_v48 }
  0x1e   :  { %358 = vmatmul.msk.f32.gmra.mxu1 %vm82_vm0, %v107_v18  ;;  %360 = vmatmul.msk.f32.vlgmr.msra.gmra.mxu2 %vm82_vm0, %v144_v49  ;;  %v72_v18 = vld [vmem:[#allocation2 + $0x40] sm:$0xff] }
  0x1f   :  { %321 = vmatpush.msrb.mxu1 %v76_v14 }
  0x21   :  { %322 = vmatpush.msrb.mxu1 %v75_v15 }
  0x23   :  { %323 = vmatpush.msrb.mxu1 %v74_v16 }
  0x25   :  { %324 = vmatpush.msrb.mxu1 %v73_v17 }
  0x26   :  { %359 = vmatmul.msk.f32.gmra.mxu1 %vm82_vm0, %v108_v19  ;;  %361 = vmatmul.msk.f32.gmra.mxu2 %vm82_vm0, %v145_v52 }
  0x27   :  { %325 = vmatpush.msrb.mxu1 %v72_v18 }
  0x2e   :  { %362 = vmatmul.msk.f32.gmra.mxu2 %vm82_vm0, %v146_v55 }
  0x93   :  { %v135_v20 = vpop.f32.mrf.mxu1 }
  0x94   :  { %v103_v28 = vpop.f32.mrf.mxu0  ;;  %v136_v33 = vadd.f32 %v135_v20, %v62_v23  ;;  %v71_v20 = vld [vmem:[#allocation2 + $0x38] sm:$0xff] }
  0x95   :  { %v104_v30 = vadd.f32 %v103_v28, %v61_v27  ;;  %326 = vmatpush.msrb.mxu1 %v71_v20  ;;  %v69_v27 = vld [vmem:[#allocation2 + $0x28] sm:$0xff]  ;;  %v68_v28 = vld [vmem:[#allocation2 + $0x20] sm:$0xff] }
  0x97   :  { %v188_v34 = vmul.f32 %v542_v32, %v104_v30  ;;  %v209_v36 = vmul.f32 %v187_v35, %v104_v30  ;;  %v66_v30 = vld [vmem:[#allocation2 + $0x10] sm:$0xff] }
  0x9b   :  { %v138_v21 = vpop.f32.mrf.mxu1 }
  0x9c   :  { %v139_v29 = vadd.f32 %v138_v21, %v62_v23 }
  0xa1   :  { %v173_v62 = vpop.f32.mrf.mxu2 }
  0xa2   :  { %v174_v10 = vadd.f32 %v173_v62, %v63_v6 }
  0xa3   :  { %v141_v24 = vpop.f32.mrf.mxu1 }
  0xa4   :  { %v142_v26 = vadd.f32 %v141_v24, %v62_v23 }
  0xa6   :  { %202 = vmatpush.xpose.msra.mxu3 %v142_v26 }
  0xa9   :  { %v176_v3 = vpop.f32.mrf.mxu2 }
  0xaa   :  { %203 = vmatpush.xpose.msra.mxu3 %v139_v29  ;;  %v177_v8 = vadd.f32 %v176_v3, %v63_v6 }
  0xae   :  { %204 = vmatpush.xpose.msra.mxu3 %v136_v33 }
  0xb1   :  { %205 = vmatmul.f32.vlgmr.msra.gmra.mxu3 %v188_v34  ;;  %v179_v7 = vpop.f32.mrf.mxu2 }
  0xb2   :  { %223 = vmatpush.xpose.msrb.mxu3 %v142_v26  ;;  %v180_v9 = vadd.f32 %v179_v7, %v63_v6  ;;  %v70_v26 = vld [vmem:[#allocation2 + $0x30] sm:$0xff] }
  0xb3   :  { %327 = vmatpush.msrb.mxu1 %v70_v26 }
  0xb4   :  { %364 = vmatpush.msk.msrb.mxu0 %vm267_vm6, %v180_v9 }
  0xb5   :  { %328 = vmatpush.msrb.mxu1 %v69_v27 }
  0xb6   :  { %224 = vmatpush.xpose.msrb.mxu3 %v139_v29  ;;  %285 = vmatpush.msrb.mxu0 %v177_v8  ;;  %v67_v29 = vld [vmem:[#allocation2 + $0x18] sm:$0xff] }
  0xb7   :  { %329 = vmatpush.msrb.mxu1 %v68_v28 }
  0xb8   :  { %286 = vmatpush.msrb.mxu0 %v174_v10 }
  0xb9   :  { %330 = vmatpush.msrb.mxu1 %v67_v29 }
  0xba   :  { %225 = vmatpush.xpose.msrb.mxu3 %v136_v33  ;;  %366 = vmatpush.msk.msra.mxu0 %vm267_vm6, %v180_v9  ;;  %v64_v33 = vld [vmem:[#allocation2] sm:$0xff] }
  0xbb   :  { %331 = vmatpush.msrb.mxu1 %v66_v30 }
  0xbc   :  { %308 = vmatpush.msra.mxu0 %v177_v8 }
  0xbd   :  { %226 = vmatmul.f32.vlgmr.msrb.gmra.mxu3 %v209_v36  ;;  %332 = vmatpush.msrb.mxu1 %v65_v31 }
  0xbe   :  { %309 = vmatpush.msra.mxu0 %v174_v10 }
  0xbf   :  { %333 = vmatpush.msrb.mxu1 %v64_v33 }
 0x134   :  { %v206_v50 = vpop.f32.mrf.mxu3 }
 0x135   :  { %v238_v51 = vsel %vm237_vm4, %v206_v50, -1e+30 }
 0x136   :  { %v240_v53 = vsel %vm239_vm5, %v238_v51, -inf }
 0x137   :  { %241 = vmax.xlane.f32.xlu0 %v240_v53 }
 0x140   :  { %v227_v54 = vpop.f32.mrf.mxu3 }
 0x141   :  { %v251_v56 = vsel %vm237_vm4, %v227_v54, -1e+30 }
 0x142   :  { %v252_v57 = vsel %vm239_vm5, %v251_v56, -inf }
 0x143   :  { %253 = vmax.xlane.f32.xlu0 %v252_v57 }
 0x1aa   :  { %v242_v58 = vpop.xlane.xlu0 %241 }
 0x1ab   :  { %v243_v59 = vsub.f32 %v238_v51, %v242_v58 }
 0x1ad   :  { %v244_v60 = vmul.f32 1.442695, %v243_v59 }
 0x1af   :  { %374 = vpow2.f32 %v244_v60 }
 0x1b5   :  { %v375_v0 = vpop.eup %374 }
 0x1b6   :  { %v254_v61 = vpop.xlane.xlu0 %253  ;;  %v246_v2 = vsel %vm239_vm5, %v375_v0, 0.0 }
 0x1b7   :  { %v255_v63 = vsub.f32 %v251_v56, %v254_v61  ;;  %247 = vadd.xlane.f32.xlu1 %v246_v2 }
 0x1b9   :  { %v256_v1 = vmul.f32 1.442695, %v255_v63 }
 0x1bb   :  { %376 = vpow2.f32 %v256_v1 }
 0x1c1   :  { %v377_v4 = vpop.eup %376 }
 0x1c2   :  { %v258_v5 = vsel %vm239_vm5, %v377_v4, 0.0 }
 0x1c3   :  { %259 = vadd.xlane.f32.xlu1 %v258_v5 }
 0x22a   :  { %v248_v19 = vpop.xlane.xlu1 %247 }
 0x22b   :  { %378 = vrcp.f32 %v248_v19 }
 0x231   :  { %v379_v21 = vpop.eup %378 }
 0x232   :  { %v250_v22 = vmul.f32 %v379_v21, %v375_v0 }
 0x234   :  { %365 = vmatmul.msk.f32.vlgmr.msrb.gmra.mxu0 %vm263_vm7, %v250_v22 }
 0x236   :  { %v260_v23 = vpop.xlane.xlu1 %259 }
 0x237   :  { %380 = vrcp.f32 %v260_v23 }
 0x23d   :  { %v381_v24 = vpop.eup %380 }
 0x23e   :  { %v262_v25 = vmul.f32 %v381_v24, %v377_v4 }
 0x240   :  { %367 = vmatmul.msk.f32.vlgmr.msra.gmra.mxu0 %vm263_vm7, %v262_v25 }
 0x2b1   :  { %v288_v34 = vpop.f32.mrf.mxu0 }
 0x2b2   :  { %v314_v37 = vmul.f32 %v542_v32, %v288_v34 }
 0x2bd   :  { %v311_v36 = vpop.f32.mrf.mxu0 }
 0x2be   :  { %v315_v38 = vmul.f32 %v311_v36, %v187_v35 }
 0x2c0   :  { %v316_v39 = vadd.f32 %v315_v38, %v314_v37 }
 0x2c2   :  { %334 = vmatmul.f32.vlgmr.msrb.gmra.mxu1 %v316_v39 }
 0x33f   :  { %v335_v41 = vpop.f32.mrf.mxu1 }
 0x340   :  { %v336_v42 = vadd.f32 %v373_v40, %v335_v41 }
 0x342   :  { %338 = vst [vmem:[#allocation5] sm:$0x3] %v336_v42 }
 0x343   :  { %349 = dma.vmem_to_hbm [thread:$0]  %s345_s12, 32, %s347_s14, [#allocation4]  }
 0x344   :  { %432 = dma.done.wait [#allocation4], 32  }
 0x345   :  { %433 = vsyncadd [#allocation4], 4294967264 }
 0x346   :  { %354 = vsyncpa [#allocation3], 1 }
 0x347   :  { %355 = vsyncpa [#allocation4], 1 }

</bundles_post_ra>
